<compile_context>
chip_gen: v7x
topology: tpu7x:2x2x1
jax: 0.10.0
libtpu: 0.0.40
codegen_flags: <defaults>
</compile_context>

<pallas_src>
import functools

import jax
import jax.numpy as jnp
from jax.experimental import pallas as pl
from jax.experimental.pallas import tpu as pltpu


def _channel_attention_kernel(x_ref, w1_ref, w2_ref, o_ref, sum_ref, max_ref,
                              *, inv_hw):
    """One (batch, hw-tile) grid step.

    x_ref:   (1, C, TILE_HW)  input tile (NCHW layout, HW on lanes)
    w1_ref:  (hidden, C)      f1.weight (as in PyTorch)
    w2_ref:  (C, hidden)      f2.weight (as in PyTorch)
    o_ref:   (1, C, 1)        attention output for this batch element
    sum_ref: (C, TILE_HW)     running spatial sum   (f32 VMEM scratch)
    max_ref: (C, TILE_HW)     running spatial max   (f32 VMEM scratch)
    """
    hw_step = pl.program_id(1)
    xv = x_ref[0].astype(jnp.float32)                       # (C, TILE_HW)

    @pl.when(hw_step == 0)
    def _init():
        sum_ref[...] = jnp.zeros(sum_ref.shape, sum_ref.dtype)
        max_ref[...] = jnp.full(max_ref.shape, -jnp.inf, max_ref.dtype)

    # Streaming phase: pure element-wise accumulation (VPU), overlapped with
    # the DMA of the next x tile.  No matmul / concat / XLU work here.
    sum_ref[...] = sum_ref[...] + xv
    max_ref[...] = jnp.maximum(max_ref[...], xv)

    @pl.when(hw_step == pl.num_programs(1) - 1)
    def _finalize():
        avg = jnp.sum(sum_ref[...], axis=1, keepdims=True) * inv_hw   # (C, 1)
        mx = jnp.max(max_ref[...], axis=1, keepdims=True)             # (C, 1)

        def mlp(p):                                                   # (C, 1)
            h = jnp.maximum(
                jnp.dot(w1_ref[...], p, preferred_element_type=jnp.float32),
                0.0)                                                   # (hidden, 1)
            return jnp.dot(w2_ref[...], h,
                           preferred_element_type=jnp.float32)        # (C, 1)

        o_ref[0] = jax.nn.sigmoid(mlp(avg) + mlp(mx))                  # (C, 1)


def _pick_tile_hw(hw, c, max_tile_bytes=2 << 20):
    """Largest multiple of 128 dividing HW whose (C, TILE) f32 tile fits the budget."""
    if hw % 128 != 0:
        # Fall back to a single full-extent block (always a legal block shape).
        return hw
    max_lanes = max(128, ((max_tile_bytes // (4 * c)) // 128) * 128)
    best = 128
    t = 128
    while t <= hw:
        if hw % t == 0 and t <= max_lanes:
            best = t
        t += 128
    return best


def channel_attention(x_nchw, w1, w2, *, tile_hw=None):
    """x_nchw: (B, C, H, W) f32.  w1: (C//r, C), w2: (C, C//r).  Returns (B, C, 1, 1)."""
    B, C, H, W = x_nchw.shape
    HW = H * W
    hidden = w1.shape[0]
    assert w1.shape == (hidden, C) and w2.shape == (C, hidden)

    if tile_hw is None:
        tile_hw = _pick_tile_hw(HW, C)
    assert HW % tile_hw == 0 and (tile_hw % 128 == 0 or tile_hw == HW)
    num_hw = HW // tile_hw

    # Free reshape of NCHW -> (B, C, HW); no transpose / extra HBM pass.
    x_flat = x_nchw.reshape(B, C, HW)

    kernel = functools.partial(_channel_attention_kernel, inv_hw=1.0 / HW)

    cost = pl.CostEstimate(
        flops=2 * B * C * HW + 4 * B * 2 * C * hidden,
        transcendentals=B * C,
        bytes_accessed=B * C * HW * 4 + 2 * C * hidden * 4 + B * C * 4,
    )

    out = pl.pallas_call(
        kernel,
        out_shape=jax.ShapeDtypeStruct((B, C, 1), jnp.float32),
        grid_spec=pltpu.PrefetchScalarGridSpec(
            num_scalar_prefetch=0,
            grid=(B, num_hw),                     # reduction axis last
            in_specs=[
                pl.BlockSpec((1, C, tile_hw), lambda b, s: (b, 0, s)),
                pl.BlockSpec((hidden, C), lambda b, s: (0, 0)),
                pl.BlockSpec((C, hidden), lambda b, s: (0, 0)),
            ],
            out_specs=pl.BlockSpec((1, C, 1), lambda b, s: (b, 0, 0)),
            scratch_shapes=[
                pltpu.VMEM((C, tile_hw), jnp.float32),   # running sum
                pltpu.VMEM((C, tile_hw), jnp.float32),   # running max
            ],
        ),
        compiler_params=pltpu.CompilerParams(
            dimension_semantics=("parallel", "arbitrary"),
        ),
        cost_estimate=cost,
    )(x_flat, w1, w2)

    # Back to PyTorch's (B, C, 1, 1).
    return out.reshape(B, C, 1, 1)


def channel_attention_ref(x_nchw, w1, w2):
    """Pure-JAX reference matching the PyTorch module."""
    avg = jnp.mean(x_nchw, axis=(2, 3))                      # (B, C)
    mx = jnp.max(x_nchw, axis=(2, 3))                        # (B, C)

    def mlp(p):                                              # p: (B, C)
        h = jnp.maximum(p @ w1.T, 0.0)                       # (B, C//r)
        return h @ w2.T                                      # (B, C)

    out = jax.nn.sigmoid(mlp(avg) + mlp(mx))                 # (B, C)
    return out[:, :, None, None]


if __name__ == "__main__":
    B, C, H, W = 2, 64, 32, 32
    ratio = 16
    hidden = C // ratio

    key = jax.random.PRNGKey(0)
    kx, k1, k2 = jax.random.split(key, 3)

    x = jax.random.normal(kx, (B, C, H, W), dtype=jnp.float32)
    # Conv2d 1x1 weights (no bias): f1.weight (C//r, C), f2.weight (C, C//r)
    w1 = jax.random.normal(k1, (hidden, C), dtype=jnp.float32) * 0.1
    w2 = jax.random.normal(k2, (C, hidden), dtype=jnp.float32) * 0.1

    # tile_hw=256 -> 4 spatial tiles per batch element, exercising the tiled
    # running-sum / running-max accumulation + finalize path.
    out = channel_attention(x, w1, w2, tile_hw=256)
    out = jax.block_until_ready(out)

    ref = channel_attention_ref(x, w1, w2)
    assert out.shape == (B, C, 1, 1)
    assert jnp.allclose(out, ref, atol=1e-5, rtol=1e-5)

    print("KERNEL_OK")
</pallas_src>

<mosaic_0001>
module attributes {stable_mosaic.version = 11 : i64} {
  func.func @_channel_attention_kernel(%arg0: i32, %arg1: i32, %arg2: memref<1x64x256xf32, #tpu.memory_space<vmem>>, %arg3: memref<4x64xf32, #tpu.memory_space<vmem>>, %arg4: memref<64x4xf32, #tpu.memory_space<vmem>>, %arg5: memref<1x64x1xf32, #tpu.memory_space<vmem>>, %arg6: memref<64x256xf32, #tpu.memory_space<vmem>>, %arg7: memref<64x256xf32, #tpu.memory_space<vmem>>) attributes {dimension_semantics = [#tpu.dimension_semantics<parallel>, #tpu.dimension_semantics<arbitrary>], iteration_bounds = array<i64: 2, 4>, scalar_prefetch = 0 : i64, scratch_operands = 2 : i64, tpu.core_type = #tpu.core_type<tc>, window_params = [{transform_indices = @transform_0, window_bounds = array<i64: 1, 64, 256>}, {pipeline_mode = #tpu.pipeline_mode<synchronous>, transform_indices = @transform_1, window_bounds = array<i64: 4, 64>}, {pipeline_mode = #tpu.pipeline_mode<synchronous>, transform_indices = @transform_2, window_bounds = array<i64: 64, 4>}, {transform_indices = @transform_3, window_bounds = array<i64: 1, 64, 1>}]} {
    %c0 = arith.constant 0 : index
    %c0_0 = arith.constant 0 : index
    %c0_1 = arith.constant 0 : index
    %0 = vector.load %arg2[%c0, %c0_0, %c0_1] : memref<1x64x256xf32, #tpu.memory_space<vmem>>, vector<1x64x256xf32>
    %1 = vector.shape_cast %0 : vector<1x64x256xf32> to vector<64x256xf32>
    %c0_i32 = arith.constant 0 : i32
    %2 = arith.cmpi eq, %arg1, %c0_i32 : i32
    %3 = arith.extui %2 : i1 to i32
    %c0_i32_2 = arith.constant 0 : i32
    %4 = arith.cmpi ne, %3, %c0_i32_2 : i32
    scf.if %4 {
      %cst = arith.constant 0.000000e+00 : f32
      %14 = vector.broadcast %cst : f32 to vector<64x256xf32>
      %c0_12 = arith.constant 0 : index
      %c0_13 = arith.constant 0 : index
      %15 = vector.load %arg6[%c0_12, %c0_13] : memref<64x256xf32, #tpu.memory_space<vmem>>, vector<64x256xf32>
      tpu.vector_store %arg6[%c0_12, %c0_13], %14 {strides = array<i32>} : memref<64x256xf32, #tpu.memory_space<vmem>>, vector<64x256xf32>,
      %cst_14 = arith.constant 0xFF800000 : f32
      %16 = vector.broadcast %cst_14 : f32 to vector<64x256xf32>
      %c0_15 = arith.constant 0 : index
      %c0_16 = arith.constant 0 : index
      %17 = vector.load %arg7[%c0_15, %c0_16] : memref<64x256xf32, #tpu.memory_space<vmem>>, vector<64x256xf32>
      tpu.vector_store %arg7[%c0_15, %c0_16], %16 {strides = array<i32>} : memref<64x256xf32, #tpu.memory_space<vmem>>, vector<64x256xf32>,
    } else {
    }
    %c0_3 = arith.constant 0 : index
    %c0_4 = arith.constant 0 : index
    %5 = vector.load %arg6[%c0_3, %c0_4] : memref<64x256xf32, #tpu.memory_space<vmem>>, vector<64x256xf32>
    %6 = arith.addf %5, %1 : vector<64x256xf32>
    %c0_5 = arith.constant 0 : index
    %c0_6 = arith.constant 0 : index
    %7 = vector.load %arg6[%c0_5, %c0_6] : memref<64x256xf32, #tpu.memory_space<vmem>>, vector<64x256xf32>
    tpu.vector_store %arg6[%c0_5, %c0_6], %6 {strides = array<i32>} : memref<64x256xf32, #tpu.memory_space<vmem>>, vector<64x256xf32>,
    %c0_7 = arith.constant 0 : index
    %c0_8 = arith.constant 0 : index
    %8 = vector.load %arg7[%c0_7, %c0_8] : memref<64x256xf32, #tpu.memory_space<vmem>>, vector<64x256xf32>
    %9 = arith.maximumf %8, %1 : vector<64x256xf32>
    %c0_9 = arith.constant 0 : index
    %c0_10 = arith.constant 0 : index
    %10 = vector.load %arg7[%c0_9, %c0_10] : memref<64x256xf32, #tpu.memory_space<vmem>>, vector<64x256xf32>
    tpu.vector_store %arg7[%c0_9, %c0_10], %9 {strides = array<i32>} : memref<64x256xf32, #tpu.memory_space<vmem>>, vector<64x256xf32>,
    %c3_i32 = arith.constant 3 : i32
    %11 = arith.cmpi eq, %arg1, %c3_i32 : i32
    %12 = arith.extui %11 : i1 to i32
    %c0_i32_11 = arith.constant 0 : i32
    %13 = arith.cmpi ne, %12, %c0_i32_11 : i32
    scf.if %13 {
      %c0_12 = arith.constant 0 : index
      %c0_13 = arith.constant 0 : index
      %14 = vector.load %arg6[%c0_12, %c0_13] : memref<64x256xf32, #tpu.memory_space<vmem>>, vector<64x256xf32>
      %cst = arith.constant dense<0.000000e+00> : vector<64xf32>
      %15 = vector.multi_reduction <add>, %14, %cst [1] : vector<64x256xf32> to vector<64xf32>
      %16 = vector.shape_cast %15 : vector<64xf32> to vector<64x1xf32>
      %cst_14 = arith.constant 9.765625E-4 : f32
      %17 = vector.broadcast %cst_14 : f32 to vector<64x1xf32>
      %18 = arith.mulf %16, %17 : vector<64x1xf32>
      %c0_15 = arith.constant 0 : index
      %c0_16 = arith.constant 0 : index
      %19 = vector.load %arg7[%c0_15, %c0_16] : memref<64x256xf32, #tpu.memory_space<vmem>>, vector<64x256xf32>
      %cst_17 = arith.constant dense<0xFF800000> : vector<64xf32>
      %20 = vector.multi_reduction <maximumf>, %19, %cst_17 [1] : vector<64x256xf32> to vector<64xf32>
      %21 = vector.shape_cast %20 : vector<64xf32> to vector<64x1xf32>
      %c0_18 = arith.constant 0 : index
      %c0_19 = arith.constant 0 : index
      %22 = vector.load %arg3[%c0_18, %c0_19] : memref<4x64xf32, #tpu.memory_space<vmem>>, vector<4x64xf32>
      %cst_20 = arith.constant dense<0.000000e+00> : vector<4x1xf32>
      %23 = tpu.matmul %22, %18, %cst_20 {dimension_numbers = #tpu.dot_dimension_numbers<[1], [0], [0], [1], [0, 0, 1, 1], [], []>} : vector<4x64xf32>, vector<64x1xf32>, vector<4x1xf32> -> vector<4x1xf32>
      %cst_21 = arith.constant 0.000000e+00 : f32
      %24 = vector.broadcast %cst_21 : f32 to vector<4x1xf32>
      %25 = arith.maximumf %23, %24 : vector<4x1xf32>
      %c0_22 = arith.constant 0 : index
      %c0_23 = arith.constant 0 : index
      %26 = vector.load %arg4[%c0_22, %c0_23] : memref<64x4xf32, #tpu.memory_space<vmem>>, vector<64x4xf32>
      %cst_24 = arith.constant dense<0.000000e+00> : vector<64x1xf32>
      %27 = tpu.matmul %26, %25, %cst_24 {dimension_numbers = #tpu.dot_dimension_numbers<[1], [0], [0], [1], [0, 0, 1, 1], [], []>} : vector<64x4xf32>, vector<4x1xf32>, vector<64x1xf32> -> vector<64x1xf32>
      %c0_25 = arith.constant 0 : index
      %c0_26 = arith.constant 0 : index
      %28 = vector.load %arg3[%c0_25, %c0_26] : memref<4x64xf32, #tpu.memory_space<vmem>>, vector<4x64xf32>
      %cst_27 = arith.constant dense<0.000000e+00> : vector<4x1xf32>
      %29 = tpu.matmul %28, %21, %cst_27 {dimension_numbers = #tpu.dot_dimension_numbers<[1], [0], [0], [1], [0, 0, 1, 1], [], []>} : vector<4x64xf32>, vector<64x1xf32>, vector<4x1xf32> -> vector<4x1xf32>
      %cst_28 = arith.constant 0.000000e+00 : f32
      %30 = vector.broadcast %cst_28 : f32 to vector<4x1xf32>
      %31 = arith.maximumf %29, %30 : vector<4x1xf32>
      %c0_29 = arith.constant 0 : index
      %c0_30 = arith.constant 0 : index
      %32 = vector.load %arg4[%c0_29, %c0_30] : memref<64x4xf32, #tpu.memory_space<vmem>>, vector<64x4xf32>
      %cst_31 = arith.constant dense<0.000000e+00> : vector<64x1xf32>
      %33 = tpu.matmul %32, %31, %cst_31 {dimension_numbers = #tpu.dot_dimension_numbers<[1], [0], [0], [1], [0, 0, 1, 1], [], []>} : vector<64x4xf32>, vector<4x1xf32>, vector<64x1xf32> -> vector<64x1xf32>
      %34 = arith.addf %27, %33 : vector<64x1xf32>
      %35 = arith.negf %34 : vector<64x1xf32>
      %36 = math.exp %35 : vector<64x1xf32>
      %cst_32 = arith.constant 1.000000e+00 : f32
      %37 = vector.broadcast %cst_32 : f32 to vector<64x1xf32>
      %38 = arith.addf %37, %36 : vector<64x1xf32>
      %39 = arith.divf %37, %38 : vector<64x1xf32>
      %c0_33 = arith.constant 0 : index
      %c0_34 = arith.constant 0 : index
      %c0_35 = arith.constant 0 : index
      %40 = vector.load %arg5[%c0_33, %c0_34, %c0_35] : memref<1x64x1xf32, #tpu.memory_space<vmem>>, vector<1x64x1xf32>
      %41 = vector.shape_cast %40 : vector<1x64x1xf32> to vector<64x1xf32>
      %42 = vector.shape_cast %39 : vector<64x1xf32> to vector<1x64x1xf32>
      tpu.vector_store %arg5[%c0_33, %c0_34, %c0_35], %42 {strides = array<i32>} : memref<1x64x1xf32, #tpu.memory_space<vmem>>, vector<1x64x1xf32>,
    } else {
    }
    return
  }
  func.func @transform_0(%arg0: i32, %arg1: i32) -> (i32, i32, i32) {
    %c0_i32 = arith.constant 0 : i32
    %c0_i32_0 = arith.constant 0 : i32
    return %arg0, %c0_i32, %arg1 : i32, i32, i32
  }
  func.func @transform_1(%arg0: i32, %arg1: i32) -> (i32, i32) {
    %c0_i32 = arith.constant 0 : i32
    %c0_i32_0 = arith.constant 0 : i32
    %c0_i32_1 = arith.constant 0 : i32
    return %c0_i32, %c0_i32_0 : i32, i32
  }
  func.func @transform_2(%arg0: i32, %arg1: i32) -> (i32, i32) {
    %c0_i32 = arith.constant 0 : i32
    %c0_i32_0 = arith.constant 0 : i32
    %c0_i32_1 = arith.constant 0 : i32
    return %c0_i32, %c0_i32_0 : i32, i32
  }
  func.func @transform_3(%arg0: i32, %arg1: i32) -> (i32, i32, i32) {
    %c0_i32 = arith.constant 0 : i32
    %c0_i32_0 = arith.constant 0 : i32
    %c0_i32_1 = arith.constant 0 : i32
    return %arg0, %c0_i32, %c0_i32_0 : i32, i32, i32
  }
}

</mosaic_0001>

<bundles_post_ra>
// kernel: tpu_custom_call.1
= control target key start
LH: loop header
LB: loop body
LE: loop exit
PB: predicated region body
PF: predicated region fallthrough
CT: control target
= control target key end

     0   :  { %8 = vsyncpa [#allocation5], 0  ;;  %s1680_s0 = inlined_call_operand.hbm [shape: f32[2,64,1024], index: 0, kind: input, shape index: {}]   ;;  %s1681_s1 = inlined_call_operand.vmem [shape: f32[4,64], index: 1, kind: input, shape index: {}]   ;;  %s1682_s2 = inlined_call_operand.vmem [shape: f32[64,4], index: 2, kind: input, shape index: {}]   ;;  %s1683_s3 = inlined_call_operand.vmem [shape: f32[2,64,1], index: 3, kind: output, shape index: {}]  }
   0x1   :  { %10 = vsyncpa [#allocation5 + $0x1], 0  ;;  %s1400_s12 = smov 0   ;;  %s1402_s13 = smov 0  }
   0x2   :  { %s1404_s14 = smov 0   ;;  %s1406_s15 = smov 0  }
   0x3   :  { %s1408_s16 = smov 0   ;;  %s1410_s17 = smov 0  }
   0x4   :  { %s1412_s18 = smov 0   ;;  %s1414_s19 = smov 0  }
   0x5 LB: > { %s983_s20 = sadd.s32 4294967295, %s1369_s19   ;;  %s25_s21 = sadd.s32 1, %s1361_s17  ;;  %s1369_s19 = sphi %s1414_s19, %s16_s19   ;;  %s1365_s18 = sphi %s1412_s18, %s1693_s18   ;;  %s1361_s17 = sphi %s1410_s17, %s1692_s17   ;;  %s1357_s16 = sphi %s1408_s16, %s1691_s16   ;;  %s1353_s15 = sphi %s1406_s15, %s1690_s15   ;;  %s1349_s14 = sphi %s1404_s14, %s1689_s14   ;;  %s1345_s13 = sphi %s1402_s13, %s1688_s13   ;;  %s1341_s12 = sphi %s1400_s12, %s1687_s12  }
   0x6   : > { %p26_p0 = scmp.ge.s32.totalorder %s25_s21, 4  ;;  %s28_s22 = sadd.s32 1, %s1365_s18 }
   0x7   : > { %s37_s23 = sadd.s32 1, %s1349_s14  ;;  %p44_p1 = scmp.ne.s32.totalorder %s1349_s14, %s1345_s13 }
   0x8   : > { %s1695_s21 = smov (%p26_p0, %s25_s21), 0  ;;  %s1697_s22 = smov (!%p26_p0, %s28_s22), %s1365_s18 }
   0x9   : > { %s33_s24 = ssub.s32 %s1361_s17, %s1695_s21  ;;  %p45_p2 = scmp.eq.s32.totalorder %s1369_s19, 0 }
   0xa   : > { %p30_p3 = scmp.ge.s32.totalorder %s1697_s22, 2  ;;  %p50_p4 = scmp.ne.s32.totalorder %s1345_s13, %s1341_s12 }
   0xb   : > { %p1451_p5 = por %p45_p2, %p44_p1  ;;  %p51_p6 = scmp.eq.s32.totalorder %s983_s20, 0 }
   0xc   : > { %s1699_s22 = smov (%p30_p3, %s1697_s22), 0  ;;  %p1168_p8 = scmp.lt.s32.totalorder %s1369_s19, 8 }
   0xd   : > { %p1457_p7 = por %p51_p6, %p50_p4  ;;  %s32_s27 = ssub.s32 %s1365_s18, %s1699_s22 }
   0xe   : > { %s34_s28 = sor.u32 %s33_s24, %s32_s27  ;;  %s148_s29 = sand.u32 1, %s1349_s14  }
   0xf   : > { %p35_p9 = scmp.eq.s32.totalorder %s34_s28, 0  ;;  %s987_s30 = sshll.u32 %s148_s29, 7 }
  0x10   : > { %s988_s4 = sshll.u32 %s1361_s17, 1  ;;  %s989_s6 = sshll.u32 %s1365_s18, 6 }
  0x11   : > { %s1467_s5 = scalar_select %p35_p9, %s1349_s14, %s37_s23  }
  0x12   : > { %s158_s7 = sadd.s32 %s989_s6, %s988_s4  ;;  %s152_s8 = scalar_lea.vmem [#allocation4], %s987_s30 }
  0x13   : > { %s161_s9 = sshll.u32 %s152_s8, 4  ;;  %s990_s10 = sshll.u32 %s158_s7, 7  ;;  %s1470_s9 = int_to_ptr.vmem [resolvable:$true] %s161_s9 }
  0x14   : > { %s1475_s20 = scalar_lea.hbm %s1680_s0, %s990_s10  ;;  %p1481_p10 = pnand %p1168_p8, %p1451_p5 }
  0x15   : > { %s1485_s24 = scalar_lea.sflag [#allocation5], %s148_s29  ;;  %s1273_s27 = scalar_lea.hbm %s1475_s20, 2048 }
  0x16   : > { %p1274_p11 = scmp.ne.s32.totalorder %s1475_s20, %s1273_s27  ;;  %p1275_p12 = pneg %p1481_p10 }
  0x17   : > { %s1278_s30 = scalar_lea.hbm %s1680_s0, 16384  ;;  %p1279_p1 = scmp.lt.u32.totalorder %s1475_s20, %s1680_s0 }
  0x18   : > { %p1276_p13 = pnand %p1275_p12, %p1274_p11  ;;  %p1280_p2 = scmp.lt.u32.totalorder %s1278_s30, %s1273_s27 }
  0x19   : > { %p1282_p4 = scmp.lt.u32.totalorder %s1273_s27, %s1475_s20 }
  0x1a   : > { %p1277_p0 = pneg %p1276_p13  ;;  %p1281_p3 = por %p1280_p2, %p1279_p1 }
  0x1c   : > { %p1283_p5 = por %p1282_p4, %p1281_p3 }
  0x1e   : > { %p1284_p6 = pnand %p1283_p5, %p1277_p0 }
  0x20   : > { %1287 = shalt.err (!%p1284_p6)
}
  0x21   : > { %s1288_s29 = scalar_lea.vmem %s1470_s9, 2048  ;;  %s1371_s7 = smov [#allocation4]  }
  0x22   : > { %p1289_p8 = scmp.ne.s32.totalorder %s1470_s9, %s1288_s29  ;;  %s1293_s8 = sshll.u32 %s1371_s7, 4  ;;  %s1294_s8 = int_to_ptr.vmem [resolvable:$false] %s1293_s8 }
  0x23   : > { %s1295_s10 = scalar_lea.vmem %s1294_s8, 4096  ;;  %p1296_p13 = scmp.lt.s32.totalorder %s1470_s9, %s1294_s8 }
  0x24   : > { %p1291_p9 = pnand %p1289_p8, %p1275_p12  ;;  %p1297_p1 = scmp.lt.s32.totalorder %s1295_s10, %s1288_s29 }
  0x26   : > { %p1292_p11 = pneg %p1291_p9  ;;  %p1298_p2 = por %p1297_p1, %p1296_p13 }
  0x28   : > { %p1299_p3 = pnand %p1298_p2, %p1292_p11 }
  0x2a   : > { %1302 = shalt.err (!%p1299_p3)
}
  0x2b   : > { %s1372_s11 = smov 1024   ;;  %s1373_s12 = smov 256  }
  0x2c   : > { %s1374_s27 = smov 16   ;;  %p991_p12 = scmp.ge.s32.totalorder %s1369_s19, 1 }
  0x2d   : > { %1167 = dma.hbm_to_vmem [thread:$0]  (!%p1481_p10), %s1475_s20, 2048, %s1470_s9, %s1485_s24, %s1372_s11, %s1373_s12, %s1374_s27  }
  0x2e   : > { %p169_p0 = scmp.lt.s32.totalorder %s1369_s19, 9 }
  0x30   : > { %p170_p4 = pnand %p991_p12, %p169_p0 }
  0x31   : > { %s175_s25 = sand.u32 (!%p170_p4), 1, %s1345_s13  }
  0x32   : > { %173 = sbr.rel (%p170_p4) target bundleno = 763 (0x2fb), region = 32  ;;  %s992_s28 = sshll.u32 (!%p170_p4), %s175_s25, 7 }
  0x33   : > { %s176_s30 = scalar_lea.sflag (!%p170_p4), [#allocation5], %s175_s25  ;;  %s179_s4 = scalar_lea.vmem (!%p170_p4), [#allocation4], %s992_s28 }
  0x39   : > { %1336 = dma.done.wait (%p1457_p7), %s176_s30, 2048  }
  0x3a   : > { %1338 = vsyncadd (%p1457_p7), %s176_s30, 4294965248  ;;  %p203_p5 = scmp.lt.s32.totalorder %s1357_s16, 1  ;;  %v1527_v0 = vld [vmem:[%s179_s4] sm:$0xff]  ;;  %v1529_v1 = vld [vmem:[%s179_s4 + $0x8] sm:$0xff]  ;;  %p995_p7 = scmp.ne.s32.totalorder %s1353_s15, 0 }
  0x3b   : > { %v1531_v2 = vld [vmem:[%s179_s4 + $0x10] sm:$0xff]  ;;  %v1533_v3 = vld [vmem:[%s179_s4 + $0x18] sm:$0xff]  ;;  %v1535_v4 = vld [vmem:[%s179_s4 + $0x20] sm:$0xff]  ;;  %v1375_v16 = vmov (!%p995_p7), 0.0   ;;  %v1376_v17 = vmov (!%p995_p7), -inf  }
  0x3c   : > { %s1701_s16 = smov (!%p203_p5, %s1357_s16), 1  ;;  %v1537_v5 = vld [vmem:[%s179_s4 + $0x28] sm:$0xff]  ;;  %v1539_v6 = vld [vmem:[%s179_s4 + $0x30] sm:$0xff]  ;;  %v1541_v7 = vld [vmem:[%s179_s4 + $0x38] sm:$0xff]  ;;  %227 = sbr.rel (%p995_p7) target bundleno = 78 (0x4e), region = 40 }
  0x3d   : > { %s1027_s9 = sshll.u32 %s1701_s16, 6  ;;  %v1543_v8 = vld [vmem:[%s179_s4 + $0x40] sm:$0xff]  ;;  %v1545_v9 = vld [vmem:[%s179_s4 + $0x48] sm:$0xff]  ;;  %v1547_v10 = vld [vmem:[%s179_s4 + $0x50] sm:$0xff]  ;;  %228 = vst [vmem:[#allocation2] sm:$0xff] (!%p995_p7), %v1375_v16 }
  0x3e   : > { %s1525_s24 = scalar_lea.vmem %s1683_s3, %s1027_s9  ;;  %v1549_v11 = vld [vmem:[%s179_s4 + $0x58] sm:$0xff]  ;;  %v1551_v12 = vld [vmem:[%s179_s4 + $0x60] sm:$0xff]  ;;  %v1553_v13 = vld [vmem:[%s179_s4 + $0x68] sm:$0xff]  ;;  %229 = vst [vmem:[#allocation2 + $0x8] sm:$0xff] (!%p995_p7), %v1375_v16 }
  0x3f   : > { %v1555_v14 = vld [vmem:[%s179_s4 + $0x70] sm:$0xff]  ;;  %v1557_v15 = vld [vmem:[%s179_s4 + $0x78] sm:$0xff]  ;;  %230 = vst [vmem:[#allocation2 + $0x10] sm:$0xff] (!%p995_p7), %v1375_v16  ;;  %231 = vst [vmem:[#allocation2 + $0x18] sm:$0xff] (!%p995_p7), %v1375_v16 }
  0x40   : > { %232 = vst [vmem:[#allocation2 + $0x20] sm:$0xff] (!%p995_p7), %v1375_v16  ;;  %233 = vst [vmem:[#allocation2 + $0x28] sm:$0xff] (!%p995_p7), %v1375_v16 }
  0x41   : > { %234 = vst [vmem:[#allocation2 + $0x30] sm:$0xff] (!%p995_p7), %v1375_v16  ;;  %235 = vst [vmem:[#allocation2 + $0x38] sm:$0xff] (!%p995_p7), %v1375_v16 }
  0x42   : > { %236 = vst [vmem:[#allocation2 + $0x40] sm:$0xff] (!%p995_p7), %v1375_v16  ;;  %237 = vst [vmem:[#allocation2 + $0x48] sm:$0xff] (!%p995_p7), %v1375_v16 }
  0x43   : > { %238 = vst [vmem:[#allocation2 + $0x50] sm:$0xff] %v1375_v16  ;;  %239 = vst [vmem:[#allocation2 + $0x58] sm:$0xff] %v1375_v16 }
  0x44   : > { %240 = vst [vmem:[#allocation2 + $0x60] sm:$0xff] %v1375_v16  ;;  %241 = vst [vmem:[#allocation2 + $0x68] sm:$0xff] %v1375_v16 }
  0x45   : > { %242 = vst [vmem:[#allocation2 + $0x70] sm:$0xff] %v1375_v16  ;;  %243 = vst [vmem:[#allocation2 + $0x78] sm:$0xff] %v1375_v16 }
  0x46   : > { %244 = vst [vmem:[#allocation3] sm:$0xff] %v1376_v17  ;;  %245 = vst [vmem:[#allocation3 + $0x8] sm:$0xff] %v1376_v17 }
  0x47   : > { %246 = vst [vmem:[#allocation3 + $0x10] sm:$0xff] %v1376_v17  ;;  %247 = vst [vmem:[#allocation3 + $0x18] sm:$0xff] %v1376_v17 }
  0x48   : > { %248 = vst [vmem:[#allocation3 + $0x20] sm:$0xff] %v1376_v17  ;;  %249 = vst [vmem:[#allocation3 + $0x28] sm:$0xff] %v1376_v17 }
  0x49   : > { %250 = vst [vmem:[#allocation3 + $0x30] sm:$0xff] %v1376_v17  ;;  %251 = vst [vmem:[#allocation3 + $0x38] sm:$0xff] %v1376_v17 }
  0x4a   : > { %252 = vst [vmem:[#allocation3 + $0x40] sm:$0xff] %v1376_v17  ;;  %253 = vst [vmem:[#allocation3 + $0x48] sm:$0xff] %v1376_v17 }
  0x4b   : > { %254 = vst [vmem:[#allocation3 + $0x50] sm:$0xff] %v1376_v17  ;;  %255 = vst [vmem:[#allocation3 + $0x58] sm:$0xff] %v1376_v17 }
  0x4c   : > { %256 = vst [vmem:[#allocation3 + $0x60] sm:$0xff] %v1376_v17  ;;  %257 = vst [vmem:[#allocation3 + $0x68] sm:$0xff] %v1376_v17 }
  0x4d   : > { %258 = vst [vmem:[#allocation3 + $0x70] sm:$0xff] %v1376_v17  ;;  %259 = vst [vmem:[#allocation3 + $0x78] sm:$0xff] %v1376_v17 }
  0x4e PF: > { %v272_v42 = vld [vmem:[#allocation2 + $0x60] sm:$0xff]  ;;  %v273_v43 = vld [vmem:[#allocation2 + $0x68] sm:$0xff]  ;;  %v274_v44 = vld [vmem:[#allocation2 + $0x70] sm:$0xff]  ;;  %p996_p10 = scmp.ne.s32.totalorder %s1353_s15, 3 }
  0x4f   : > { %v260_v18 = vld [vmem:[#allocation2] sm:$0xff]  ;;  %v288_v45 = vadd.f32 %v272_v42, %v1551_v12  ;;  %v289_v46 = vadd.f32 %v273_v43, %v1553_v13  ;;  %v290_v47 = vadd.f32 %v274_v44, %v1555_v14  ;;  %v275_v48 = vld [vmem:[#allocation2 + $0x78] sm:$0xff]  ;;  %v309_v50 = vld [vmem:[#allocation3 + $0x8] sm:$0xff]  ;;  %vm1378_vm0 = vmmov (!%p996_p10), 0  }
  0x50   : > { %v261_v19 = vld [vmem:[#allocation2 + $0x8] sm:$0xff]  ;;  %v276_v21 = vadd.f32 %v260_v18, %v1527_v0  ;;  %v308_v49 = vld [vmem:[#allocation3] sm:$0xff]  ;;  %v291_v51 = vadd.f32 %v275_v48, %v1557_v15  ;;  %v325_v53 = vmax.f32 %v309_v50, %v1529_v1  ;;  %v310_v54 = vld [vmem:[#allocation3 + $0x10] sm:$0xff]  ;;  %vm449_vm1 = vcmask (!%p996_p10), 523264  }
  0x51   : > { %v262_v20 = vld [vmem:[#allocation2 + $0x10] sm:$0xff]  ;;  %v277_v22 = vadd.f32 %v261_v19, %v1529_v1  ;;  %v263_v24 = vld [vmem:[#allocation2 + $0x18] sm:$0xff]  ;;  %v324_v52 = vmax.f32 %v308_v49, %v1527_v0  ;;  %v312_v56 = vld [vmem:[#allocation3 + $0x20] sm:$0xff]  ;;  %304 = vst [vmem:[#allocation2 + $0x60] sm:$0xff] %v288_v45  ;;  %v326_v57 = vmax.f32 %v310_v54, %v1531_v2  ;;  %vm603_vm2 = vcmask (!%p996_p10), 31744  }
  0x52   : > { %v278_v23 = vadd.f32 %v262_v20, %v1531_v2  ;;  %v264_v25 = vld [vmem:[#allocation2 + $0x20] sm:$0xff]  ;;  %v265_v26 = vld [vmem:[#allocation2 + $0x28] sm:$0xff]  ;;  %v279_v27 = vadd.f32 %v263_v24, %v1533_v3  ;;  %292 = vst [vmem:[#allocation2] sm:$0xff] %v276_v21  ;;  %v311_v55 = vld [vmem:[#allocation3 + $0x18] sm:$0xff]  ;;  %v328_v59 = vmax.f32 %v312_v56, %v1535_v4  ;;  %vm628_vm3 = vcmask (!%p996_p10), 1043456  }
  0x53   : > { %v280_v28 = vadd.f32 %v264_v25, %v1535_v4  ;;  %v281_v29 = vadd.f32 %v265_v26, %v1537_v5  ;;  %v266_v30 = vld [vmem:[#allocation2 + $0x30] sm:$0xff]  ;;  %v267_v31 = vld [vmem:[#allocation2 + $0x38] sm:$0xff]  ;;  %293 = vst [vmem:[#allocation2 + $0x8] sm:$0xff] %v277_v22  ;;  %305 = vst [vmem:[#allocation2 + $0x68] sm:$0xff] %v289_v46  ;;  %v327_v58 = vmax.f32 %v311_v55, %v1533_v3  ;;  %vm893_vm4 = vcmask (!%p996_p10), 7168  }
  0x54   : > { %v268_v32 = vld [vmem:[#allocation2 + $0x40] sm:$0xff]  ;;  %294 = vst [vmem:[#allocation2 + $0x10] sm:$0xff] %v278_v23  ;;  %v282_v33 = vadd.f32 %v266_v30, %v1539_v6  ;;  %v283_v34 = vadd.f32 %v267_v31, %v1541_v7  ;;  %v269_v36 = vld [vmem:[#allocation2 + $0x48] sm:$0xff]  ;;  %295 = vst [vmem:[#allocation2 + $0x18] sm:$0xff] %v279_v27 }
  0x55   : > { %v284_v35 = vadd.f32 %v268_v32, %v1543_v8  ;;  %v270_v37 = vld [vmem:[#allocation2 + $0x50] sm:$0xff]  ;;  %v271_v38 = vld [vmem:[#allocation2 + $0x58] sm:$0xff]  ;;  %296 = vst [vmem:[#allocation2 + $0x20] sm:$0xff] %v280_v28  ;;  %297 = vst [vmem:[#allocation2 + $0x28] sm:$0xff] %v281_v29  ;;  %v285_v39 = vadd.f32 %v269_v36, %v1545_v9 }
  0x56   : > { %v286_v40 = vadd.f32 %v270_v37, %v1547_v10  ;;  %v287_v41 = vadd.f32 %v271_v38, %v1549_v11  ;;  %298 = vst [vmem:[#allocation2 + $0x30] sm:$0xff] %v282_v33  ;;  %299 = vst [vmem:[#allocation2 + $0x38] sm:$0xff] %v283_v34  ;;  %v313_v60 = vld [vmem:[#allocation3 + $0x28] sm:$0xff]  ;;  %v314_v61 = vld [vmem:[#allocation3 + $0x30] sm:$0xff] }
  0x57   : > { %300 = vst [vmem:[#allocation2 + $0x40] sm:$0xff] %v284_v35  ;;  %301 = vst [vmem:[#allocation2 + $0x48] sm:$0xff] %v285_v39  ;;  %v315_v62 = vld [vmem:[#allocation3 + $0x38] sm:$0xff]  ;;  %v329_v63 = vmax.f32 %v313_v60, %v1537_v5  ;;  %v330_v0 = vmax.f32 %v314_v61, %v1539_v6  ;;  %v316_v16 = vld [vmem:[#allocation3 + $0x40] sm:$0xff] }
  0x58   : > { %302 = vst [vmem:[#allocation2 + $0x50] sm:$0xff] %v286_v40  ;;  %303 = vst [vmem:[#allocation2 + $0x58] sm:$0xff] %v287_v41  ;;  %v331_v1 = vmax.f32 %v315_v62, %v1541_v7  ;;  %v317_v17 = vld [vmem:[#allocation3 + $0x48] sm:$0xff]  ;;  %v318_v18 = vld [vmem:[#allocation3 + $0x50] sm:$0xff]  ;;  %v332_v2 = vmax.f32 %v316_v16, %v1543_v8  ;;  %v1377_v62 = vmov (!%p996_p10), 0.0|0.0  }
  0x59   : > { %306 = vst [vmem:[#allocation2 + $0x70] sm:$0xff] %v290_v47  ;;  %307 = vst [vmem:[#allocation2 + $0x78] sm:$0xff] %v291_v51  ;;  %v333_v3 = vmax.f32 %v317_v17, %v1545_v9  ;;  %v334_v4 = vmax.f32 %v318_v18, %v1547_v10  ;;  %v319_v19 = vld [vmem:[#allocation3 + $0x58] sm:$0xff]  ;;  %v320_v20 = vld [vmem:[#allocation3 + $0x60] sm:$0xff]  ;;  %1130 = vmatprep.subr.bf16.mxu1 (!%p996_p10), %v1377_v62  ;;  %v1379_v17 = vmov (!%p996_p10), 0.0  }
  0x5a   : > { %340 = vst [vmem:[#allocation3] sm:$0xff] %v324_v52  ;;  %341 = vst [vmem:[#allocation3 + $0x8] sm:$0xff] %v325_v53  ;;  %v321_v21 = vld [vmem:[#allocation3 + $0x68] sm:$0xff]  ;;  %v335_v5 = vmax.f32 %v319_v19, %v1549_v11  ;;  %v336_v6 = vmax.f32 %v320_v20, %v1551_v12  ;;  %v322_v22 = vld [vmem:[#allocation3 + $0x70] sm:$0xff]  ;;  %1080 = vmatprep.mubr.msk.f32.mxu1 (!%p996_p10), %vm1378_vm0, %v1379_v17 }
  0x5b   : > { %342 = vst [vmem:[#allocation3 + $0x10] sm:$0xff] %v326_v57  ;;  %343 = vst [vmem:[#allocation3 + $0x18] sm:$0xff] %v327_v58  ;;  %v337_v7 = vmax.f32 %v321_v21, %v1553_v13  ;;  %v323_v23 = vld [vmem:[#allocation3 + $0x78] sm:$0xff]  ;;  %v338_v8 = vmax.f32 %v322_v22, %v1555_v14  ;;  %359 = sbr.rel (%p996_p10) target bundleno = 763 (0x2fb), region = 44  ;;  %v360_v12 = vld [vmem:[#allocation2] sm:$0xff] (!%p996_p10) }
  0x5c   : > { %344 = vst [vmem:[#allocation3 + $0x20] sm:$0xff] %v328_v59  ;;  %345 = vst [vmem:[#allocation3 + $0x28] sm:$0xff] %v329_v63  ;;  %v339_v9 = vmax.f32 %v323_v23, %v1557_v15  ;;  %v364_v10 = vld [vmem:[#allocation2 + $0x20] sm:$0xff] (!%p996_p10)  ;;  %v365_v11 = vld [vmem:[#allocation2 + $0x28] sm:$0xff] (!%p996_p10) }
  0x5d   : > { %346 = vst [vmem:[#allocation3 + $0x30] sm:$0xff] %v330_v0  ;;  %347 = vst [vmem:[#allocation3 + $0x38] sm:$0xff] %v331_v1  ;;  %v382_v13 = vadd.f32 (!%p996_p10), %v365_v11, %v364_v10  ;;  %v361_v24 = vld [vmem:[#allocation2 + $0x8] sm:$0xff] (!%p996_p10)  ;;  %v366_v25 = vld [vmem:[#allocation2 + $0x30] sm:$0xff] (!%p996_p10) }
  0x5e   : > { %348 = vst [vmem:[#allocation3 + $0x40] sm:$0xff] %v332_v2  ;;  %349 = vst [vmem:[#allocation3 + $0x48] sm:$0xff] %v333_v3  ;;  %v367_v26 = vld [vmem:[#allocation2 + $0x38] sm:$0xff] (!%p996_p10)  ;;  %v376_v27 = vadd.f32 (!%p996_p10), %v361_v24, %v360_v12  ;;  %v362_v28 = vld [vmem:[#allocation2 + $0x10] sm:$0xff] (!%p996_p10) }
  0x5f   : > { %350 = vst [vmem:[#allocation3 + $0x50] sm:$0xff] %v334_v4  ;;  %351 = vst [vmem:[#allocation3 + $0x58] sm:$0xff] %v335_v5  ;;  %v363_v14 = vld [vmem:[#allocation2 + $0x18] sm:$0xff] (!%p996_p10)  ;;  %383 = vadd.xlane.f32.xlu1 (!%p996_p10), %v382_v13  ;;  %v385_v15 = vadd.f32 (!%p996_p10), %v367_v26, %v366_v25  ;;  %v370_v30 = vld [vmem:[#allocation2 + $0x50] sm:$0xff] (!%p996_p10) }
  0x60   : > { %352 = vst [vmem:[#allocation3 + $0x60] sm:$0xff] %v336_v6  ;;  %353 = vst [vmem:[#allocation3 + $0x68] sm:$0xff] %v337_v7  ;;  %377 = vadd.xlane.f32.xlu0 (!%p996_p10), %v376_v27  ;;  %v379_v29 = vadd.f32 (!%p996_p10), %v363_v14, %v362_v28  ;;  %v371_v31 = vld [vmem:[#allocation2 + $0x58] sm:$0xff] (!%p996_p10)  ;;  %v368_v32 = vld [vmem:[#allocation2 + $0x40] sm:$0xff] (!%p996_p10) }
  0x61   : > { %354 = vst [vmem:[#allocation3 + $0x70] sm:$0xff] %v338_v8  ;;  %355 = vst [vmem:[#allocation3 + $0x78] sm:$0xff] %v339_v9  ;;  %v369_v33 = vld [vmem:[#allocation2 + $0x48] sm:$0xff] (!%p996_p10)  ;;  %v391_v34 = vadd.f32 (!%p996_p10), %v371_v31, %v370_v30  ;;  %v374_v36 = vld [vmem:[#allocation2 + $0x70] sm:$0xff] (!%p996_p10) }
  0x62   : > { %v388_v35 = vadd.f32 %v369_v33, %v368_v32  ;;  %v375_v37 = vld [vmem:[#allocation2 + $0x78] sm:$0xff]  ;;  %v372_v38 = vld [vmem:[#allocation2 + $0x60] sm:$0xff]  ;;  %v373_v39 = vld [vmem:[#allocation2 + $0x68] sm:$0xff] }
  0x63   : > { %386 = vadd.xlane.f32.xlu1 %v385_v15  ;;  %v397_v40 = vadd.f32 %v375_v37, %v374_v36  ;;  %v394_v41 = vadd.f32 %v373_v39, %v372_v38  ;;  %v410_v42 = vld [vmem:[#allocation3 + $0x10] sm:$0xff]  ;;  %v411_v43 = vld [vmem:[#allocation3 + $0x18] sm:$0xff]  ;;  %v408_v44 = vld [vmem:[#allocation3] sm:$0xff] }
  0x64   : > { %380 = vadd.xlane.f32.xlu0 %v379_v29  ;;  %v409_v45 = vld [vmem:[#allocation3 + $0x8] sm:$0xff]  ;;  %v427_v46 = vmax.f32 %v410_v42, %v411_v43  ;;  %v414_v48 = vld [vmem:[#allocation3 + $0x30] sm:$0xff]  ;;  %v415_v49 = vld [vmem:[#allocation3 + $0x38] sm:$0xff] }
  0x65   : > { %v424_v47 = vmax.f32 %v408_v44, %v409_v45  ;;  %v412_v50 = vld [vmem:[#allocation3 + $0x20] sm:$0xff]  ;;  %v413_v51 = vld [vmem:[#allocation3 + $0x28] sm:$0xff]  ;;  %v433_v52 = vmax.f32 %v414_v48, %v415_v49  ;;  %v526_v45 = vld [vmem:[%s1682_s2 + $0x10] sm:$0xff] }
  0x66   : > { %v430_v53 = vmax.f32 %v412_v50, %v413_v51  ;;  %v418_v54 = vld [vmem:[#allocation3 + $0x50] sm:$0xff]  ;;  %v419_v55 = vld [vmem:[#allocation3 + $0x58] sm:$0xff]  ;;  %v416_v56 = vld [vmem:[#allocation3 + $0x40] sm:$0xff] }
  0x67   : > { %392 = vadd.xlane.f32.xlu1 %v391_v34  ;;  %v417_v57 = vld [vmem:[#allocation3 + $0x48] sm:$0xff]  ;;  %v439_v58 = vmax.f32 %v418_v54, %v419_v55  ;;  %v420_v63 = vld [vmem:[#allocation3 + $0x60] sm:$0xff]  ;;  %v530_v49 = vld [vmem:[%s1682_s2 + $0x30] sm:$0xff] }
  0x68   : > { %389 = vadd.xlane.f32.xlu0 %v388_v35  ;;  %v436_v59 = vmax.f32 %v416_v56, %v417_v57  ;;  %v422_v60 = vld [vmem:[#allocation3 + $0x70] sm:$0xff]  ;;  %v423_v61 = vld [vmem:[#allocation3 + $0x78] sm:$0xff]  ;;  %v421_v0 = vld [vmem:[#allocation3 + $0x68] sm:$0xff] }
  0x69   : > { %v445_v1 = vmax.f32 %v422_v60, %v423_v61  ;;  %v442_v16 = vmax.f32 %v420_v63, %v421_v0  ;;  %v448_v29 = vld [vmem:[%s1681_s1] sm:$0xf]  ;;  %v525_v43 = vld [vmem:[%s1682_s2 + $0x8] sm:$0xff]  ;;  %v531_v50 = vld [vmem:[%s1682_s2 + $0x38] sm:$0xff] }
  0x6a   : > { %v524_v37 = vld [vmem:[%s1682_s2] sm:$0xff]  ;;  %v529_v48 = vld [vmem:[%s1682_s2 + $0x28] sm:$0xff] }
  0x6b   : > { %398 = vadd.xlane.f32.xlu1 %v397_v40  ;;  %1104 = vmatprep.mubr.msk.f32.mxu0 %vm603_vm2, %v524_v37 }
  0x6c   : > { %395 = vadd.xlane.f32.xlu0 %v394_v41 }
  0x6f   : > { %428 = vmax.xlane.f32.xlu1 %v427_v46  ;;  %v527_v46 = vld [vmem:[%s1682_s2 + $0x18] sm:$0xff] }
  0x70   : > { %425 = vmax.xlane.f32.xlu0 %v424_v47  ;;  %v528_v47 = vld [vmem:[%s1682_s2 + $0x20] sm:$0xff] }
  0x73   : > { %434 = vmax.xlane.f32.xlu1 %v433_v52 }
  0x74   : > { %431 = vmax.xlane.f32.xlu0 %v430_v53 }
  0x77   : > { %440 = vmax.xlane.f32.xlu1 %v439_v58 }
  0x78   : > { %437 = vmax.xlane.f32.xlu0 %v436_v59 }
  0x7b   : > { %446 = vmax.xlane.f32.xlu1 %v445_v1 }
  0x7c   : > { %443 = vmax.xlane.f32.xlu0 %v442_v16 }
  0xec   : > { %v384_v18 = vpop.xlane.xlu1 %383 }
  0xed   : > { %v378_v2 = vpop.xlane.xlu0 %377  ;;  %v402_v21 = vmul.f32 0.0009765625, %v384_v18 }
  0xee   : > { %v400_v19 = vmul.f32 0.0009765625, %v378_v2 }
  0xf0   : > { %v387_v3 = vpop.xlane.xlu1 %386 }
  0xf1   : > { %v381_v4 = vpop.xlane.xlu0 %380  ;;  %v403_v5 = vmul.f32 0.0009765625, %v387_v3 }
  0xf2   : > { %v401_v20 = vmul.f32 0.0009765625, %v381_v4 }
  0xf3   : > { %v1134_v9 = vpack.c.bf16 %v403_v5, %v402_v21 }
  0xf4   : > { %v1131_v6 = vpack.c.bf16 %v401_v20, %v400_v19  ;;  %v393_v7 = vpop.xlane.xlu1 %392 }
  0xf5   : > { %v390_v22 = vpop.xlane.xlu0 %389  ;;  %v405_v23 = vmul.f32 0.0009765625, %v393_v7 }
  0xf6   : > { %1132 = vmatpush3.bf16.msra.mxu1 %v1131_v6  ;;  %v404_v8 = vmul.f32 0.0009765625, %v390_v22 }
  0xf7   : > { %1133 = vmatprep.subr.bf16.mxu1 %v1377_v62 }
  0xf8   : > { %v399_v10 = vpop.xlane.xlu1 %398  ;;  %v1137_v12 = vpack.c.bf16 %v405_v23, %v404_v8 }
  0xf9   : > { %v396_v11 = vpop.xlane.xlu0 %395  ;;  %v407_v13 = vmul.f32 0.0009765625, %v399_v10 }
  0xfa   : > { %1135 = vmatpush3.bf16.msra.mxu1 %v1134_v9  ;;  %v406_v24 = vmul.f32 0.0009765625, %v396_v11 }
  0xfb   : > { %1136 = vmatprep.subr.bf16.mxu1 %v1377_v62 }
  0xfc   : > { %v429_v25 = vpop.xlane.xlu1 %428  ;;  %v1140_v27 = vpack.c.bf16 %v407_v13, %v406_v24 }
  0xfd   : > { %v426_v26 = vpop.xlane.xlu0 %425 }
  0xfe   : > { %1138 = vmatpush3.bf16.msra.mxu1 %v1137_v12  ;;  %v1143_v15 = vpack.c.bf16 %v429_v25, %v426_v26 }
  0xff   : > { %1139 = vmatprep.subr.bf16.mxu1 %v1377_v62 }
 0x100   : > { %v435_v28 = vpop.xlane.xlu1 %434 }
 0x101   : > { %v432_v14 = vpop.xlane.xlu0 %431 }
 0x102   : > { %1141 = vmatpush3.bf16.msra.mxu1 %v1140_v27  ;;  %v1146_v32 = vpack.c.bf16 %v435_v28, %v432_v14 }
 0x103   : > { %1142 = vmatprep.subr.bf16.mxu1 %v1377_v62 }
 0x104   : > { %v441_v30 = vpop.xlane.xlu1 %440 }
 0x105   : > { %1081 = vmatmul.mubr.msk.f32.vlgmr.msra.gmra.mrb[0].mxu1 %vm449_vm1, %v448_v29  ;;  %v438_v31 = vpop.xlane.xlu0 %437 }
 0x106   : > { %1144 = vmatpush3.bf16.msra.mxu1 %v1143_v15  ;;  %1099 = vmatprep.mubr.msk.f32.mxu1 %vm1378_vm0, %v1379_v17  ;;  %v1149_v33 = vpack.c.bf16 %v441_v30, %v438_v31 }
 0x107   : > { %1145 = vmatprep.subr.bf16.mxu1 %v1377_v62 }
 0x108   : > { %v447_v34 = vpop.xlane.xlu1 %446 }
 0x109   : > { %v444_v35 = vpop.xlane.xlu0 %443 }
 0x10a   : > { %1147 = vmatpush3.bf16.msra.mxu1 %v1146_v32  ;;  %v1152_v36 = vpack.c.bf16 %v447_v34, %v444_v35 }
 0x10b   : > { %1148 = vmatprep.subr.bf16.mxu1 %v1377_v62 }
 0x10e   : > { %1150 = vmatpush3.bf16.msra.mxu1 %v1149_v33 }
 0x10f   : > { %1151 = vmatprep.subr.bf16.mxu1 %v1377_v62 }
 0x112   : > { %1153 = vmatpush3.bf16.msra.mxu1 %v1152_v36 }
 0x115   : > { %1100 = vmatmul.mubr.msk.f32.vlgmr.msra.gmra.mrb[2].mxu1 %vm449_vm1, %v448_v29 }
 0x1d8   : > { %v519_v38 = vpop.f32.mrb[0].mxu1 }
 0x1d9   : > { %v1082_v39 = vpop.f32.mrb[1].mxu1  ;;  %v523_v44 = vmax.f32 %v519_v38, 0.0 }
 0x1e8   : > { %v598_v40 = vpop.f32.mrb[2].mxu1 }
 0x1e9   : > { %v602_v41 = vmax.f32 %v598_v40, 0.0  ;;  %v1101_v42 = vpop.f32.mrb[3].mxu1 }
 0x1eb   : > { %1102 = vmatprep.subr.msk.mxu0 %vm628_vm3, %v602_v41 }
 0x1ec   : > { %1103 = vmatpush3.msk.msra.mxu0 %vm628_vm3, %v602_v41 }
 0x1ed   : > { %1105 = vmatmul.mubr.msk.f32.vlgmr.msra.gmra.mrb[0].mxu0 %vm603_vm2, %v525_v43  ;;  %1116 = vmatprep.subr.msk.mxu0 %vm628_vm3, %v523_v44 }
 0x1ee   : > { %1117 = vmatpush3.msk.msra.mxu0 %vm628_vm3, %v523_v44  ;;  %1107 = vmatprep.mubr.msk.f32.mxu0 %vm603_vm2, %v526_v45 }
 0x1f1   : > { %1108 = vmatmul.mubr.msk.f32.gmra.mrb[2].mxu0 %vm603_vm2, %v527_v46 }
 0x1f2   : > { %1110 = vmatprep.mubr.msk.f32.mxu0 %vm603_vm2, %v528_v47 }
 0x1f5   : > { %1111 = vmatmul.mubr.msk.f32.gmra.mrb[4].mxu0 %vm603_vm2, %v529_v48 }
 0x1f6   : > { %1113 = vmatprep.mubr.msk.f32.mxu0 %vm603_vm2, %v530_v49 }
 0x1f9   : > { %1114 = vmatmul.mubr.msk.f32.gmra.mrb[6].mxu0 %vm603_vm2, %v531_v50 }
 0x1fa   : > { %1118 = vmatprep.mubr.msk.f32.mxu0 %vm603_vm2, %v524_v37 }
 0x1fd   : > { %1119 = vmatmul.mubr.msk.f32.vlgmr.msra.gmra.mrb[0].mxu0 %vm603_vm2, %v525_v43 }
 0x1fe   : > { %1121 = vmatprep.mubr.msk.f32.mxu0 %vm603_vm2, %v526_v45 }
 0x201   : > { %1122 = vmatmul.mubr.msk.f32.gmra.mrb[2].mxu0 %vm603_vm2, %v527_v46 }
 0x202   : > { %1124 = vmatprep.mubr.msk.f32.mxu0 %vm603_vm2, %v528_v47 }
 0x205   : > { %1125 = vmatmul.mubr.msk.f32.gmra.mrb[4].mxu0 %vm603_vm2, %v529_v48 }
 0x206   : > { %1127 = vmatprep.mubr.msk.f32.mxu0 %vm603_vm2, %v530_v49 }
 0x209   : > { %1128 = vmatmul.mubr.msk.f32.gmra.mrb[6].mxu0 %vm603_vm2, %v531_v50 }
 0x2d0   : > { %v1120_v51 = vpop.f32.mrb[0].mxu0 }
 0x2d1   : > { %v1018_v52 = vmul.f32 -1.442695, %v1120_v51  ;;  %v806_v53 = vpop.f32.mrb[1].mxu0 }
 0x2d2   : > { %v1017_v54 = vmul.f32 -1.442695, %v806_v53 }
 0x2d3   : > { %1241 = vpow2.f32 %v1018_v52 }
 0x2d4   : > { %1243 = vpow2.f32 %v1017_v54  ;;  %v1123_v55 = vpop.f32.mrb[2].mxu0 }
 0x2d5   : > { %v1020_v56 = vmul.f32 -1.442695, %v1123_v55  ;;  %v816_v57 = vpop.f32.mrb[3].mxu0 }
 0x2d6   : > { %v1019_v58 = vmul.f32 -1.442695, %v816_v57 }
 0x2d7   : > { %1245 = vpow2.f32 %v1020_v56 }
 0x2d8   : > { %1247 = vpow2.f32 %v1019_v58  ;;  %v1126_v59 = vpop.f32.mrb[4].mxu0 }
 0x2d9   : > { %v1022_v60 = vmul.f32 -1.442695, %v1126_v59  ;;  %v826_v61 = vpop.f32.mrb[5].mxu0 }
 0x2da   : > { %v1021_v62 = vmul.f32 -1.442695, %v826_v61 }
 0x2db   : > { %1249 = vpow2.f32 %v1022_v60 }
 0x2dc   : > { %1251 = vpow2.f32 %v1021_v62  ;;  %v1129_v63 = vpop.f32.mrb[6].mxu0 }
 0x2dd   : > { %v1242_v0 = vpop.eup %1241  ;;  %v1024_v1 = vmul.f32 -1.442695, %v1129_v63  ;;  %v836_v16 = vpop.f32.mrb[7].mxu0 }
 0x2de   : > { %v1244_v17 = vpop.eup %1243  ;;  %v870_v18 = vadd.f32 1.0, %v1242_v0  ;;  %v1023_v2 = vmul.f32 -1.442695, %v836_v16 }
 0x2df   : > { %v869_v3 = vadd.f32 1.0, %v1244_v17  ;;  %1253 = vpow2.f32 %v1024_v1 }
 0x2e0   : > { %1255 = vrcp.f32 %v870_v18 }
 0x2e1   : > { %v1246_v4 = vpop.eup %1245  ;;  %1257 = vrcp.f32 %v869_v3 }
 0x2e2   : > { %v1248_v19 = vpop.eup %1247  ;;  %v872_v20 = vadd.f32 1.0, %v1246_v4  ;;  %1259 = vpow2.f32 %v1023_v2 }
 0x2e3   : > { %v871_v21 = vadd.f32 1.0, %v1248_v19 }
 0x2e4   : > { %1261 = vrcp.f32 %v872_v20 }
 0x2e5   : > { %v1250_v5 = vpop.eup %1249  ;;  %1263 = vrcp.f32 %v871_v21 }
 0x2e6   : > { %v1252_v6 = vpop.eup %1251  ;;  %v874_v7 = vadd.f32 1.0, %v1250_v5 }
 0x2e7   : > { %v873_v22 = vadd.f32 1.0, %v1252_v6 }
 0x2e8   : > { %1265 = vrcp.f32 %v874_v7 }
 0x2e9   : > { %v1254_v23 = vpop.eup %1253  ;;  %1267 = vrcp.f32 %v873_v22 }
 0x2ea   : > { %v1256_v8 = vpop.eup %1255  ;;  %v876_v9 = vadd.f32 1.0, %v1254_v23 }
 0x2eb   : > { %v1258_v10 = vpop.eup %1257  ;;  %895 = vst.msk [vmem:[%s1525_s24 + $0x8] sm:$0xff] %vm893_vm4, %v1256_v8 }
 0x2ec   : > { %v1260_v11 = vpop.eup %1259  ;;  %894 = vst.msk [vmem:[%s1525_s24] sm:$0xff] %vm893_vm4, %v1258_v10  ;;  %1269 = vrcp.f32 %v876_v9 }
 0x2ed   : > { %v875_v12 = vadd.f32 1.0, %v1260_v11 }
 0x2ee   : > { %v1262_v13 = vpop.eup %1261 }
 0x2ef   : > { %v1264_v24 = vpop.eup %1263  ;;  %897 = vst.msk [vmem:[%s1525_s24 + $0x18] sm:$0xff] %vm893_vm4, %v1262_v13  ;;  %1271 = vrcp.f32 %v875_v12 }
 0x2f0   : > { %896 = vst.msk [vmem:[%s1525_s24 + $0x10] sm:$0xff] %vm893_vm4, %v1264_v24 }
 0x2f2   : > { %v1266_v25 = vpop.eup %1265 }
 0x2f3   : > { %v1268_v26 = vpop.eup %1267  ;;  %899 = vst.msk [vmem:[%s1525_s24 + $0x28] sm:$0xff] %vm893_vm4, %v1266_v25 }
 0x2f4   : > { %898 = vst.msk [vmem:[%s1525_s24 + $0x20] sm:$0xff] %vm893_vm4, %v1268_v26 }
 0x2f6   : > { %v1270_v27 = vpop.eup %1269 }
 0x2f7   : > { %901 = vst.msk [vmem:[%s1525_s24 + $0x38] sm:$0xff] %vm893_vm4, %v1270_v27 }
 0x2f9   : > { %v1272_v28 = vpop.eup %1271 }
 0x2fa   : > { %900 = vst.msk [vmem:[%s1525_s24 + $0x30] sm:$0xff] %vm893_vm4, %v1272_v28 }
 0x2fb PF: > { %s16_s19 = sadd.s32 1, %s1369_s19   ;;  %s1687_s12 = smov %s1345_s13 }
 0x2fc   : > { %p13_p6 = scmp.ge.s32.totalorder %s16_s19, 10   ;;  %s1688_s13 = smov %s1349_s14 }
 0x2fd   : > { %s1689_s14 = smov %s1467_s5  ;;  %s1690_s15 = smov %s1361_s17 }
 0x2fe   : > { %s1691_s16 = smov %s1365_s18  ;;  %s1692_s17 = smov %s1695_s21 }
 0x2ff   : > { %s1693_s18 = smov %s1699_s22  ;;  %15 = sbr.rel (!%p13_p6) target bundleno = 5 (0x5), region = 80 }
 0x306   :  { %923 = vsyncpa [#allocation5], 1 }
 0x307   :  { %925 = vsyncpa [#allocation5 + $0x1], 1 }

</bundles_post_ra>
